<compile_context>
chip_gen: v7x
topology: tpu7x:2x2x1
jax: 0.10.0
libtpu: 0.0.40
codegen_flags: <defaults>
</compile_context>

<pallas_src>
import jax
import jax.numpy as jnp
from jax import lax
from jax.experimental import pallas as pl
from jax.experimental.pallas import tpu as pltpu


def _pick_tile(S: int, target: int) -> int:
    """Largest row tile <= target that is a multiple of 8 and divides S."""
    if S % 8 != 0:
        return S                      # block dim == full array dim is always legal
    tm = max(8, min(int(target), S))
    tm -= tm % 8
    while S % tm != 0:
        tm -= 8
    return tm


def dense_base_forward(x, wc, wo, bo, *, block_s=256):
    """
    x : (S, N) float32  -- Input
    wc: (N, N) float32  -- causal_layer.weight (PyTorch layout: out x in)
    wo: (1, N) float32  -- output_layer.weight
    bo: (1, 1) float32  -- output_layer.bias
    Returns (loss, l1) scalars.
    """
    S, N = x.shape
    assert S >= 2, "mse_loss(Output[:-1], Input[1:]) needs seq_len >= 2"

    tm = _pick_tile(S, block_s)
    n_tiles = S // tm
    inv_denom = 1.0 / float((S - 1) * N)

    def kernel(x_ref, wct_ref, wo_ref, bo_ref,            # inputs
               loss_ref, l1_ref,                          # outputs (SMEM scalars)
               w_eff_ref, acc_ref, corr_ref, carry_ref):  # VMEM scratch
        i = pl.program_id(0)

        # --- once, at the first grid step: fold relu + output weight ---------
        @pl.when(i == 0)
        def _init():
            # w_eff[j, i] = relu(W_c[i, j]) * w_o[j]   (already K-major for x @ w_eff)
            w_eff_ref[...] = jnp.maximum(wct_ref[...], 0.0) * wo_ref[...]
            acc_ref[...] = jnp.zeros_like(acc_ref)
            corr_ref[...] = jnp.zeros_like(corr_ref)
            carry_ref[...] = jnp.zeros_like(carry_ref)

        # --- per tile: streamed x path with no extra VPU work -----------------
        x_t = x_ref[...]                                           # (tm, N)
        out = lax.dot_general(
            x_t, w_eff_ref[...],
            dimension_numbers=(((1,), (0,)), ((), ())),            # canonical A @ B
            preferred_element_type=jnp.float32,
        ) + bo_ref[0, 0]                                           # (tm, N)

        # Pair Output[s] with Input[s+1] without an iota mask: roll within the
        # tile (XLU slot), accumulate elementwise (VPU), then fix the two
        # boundary rows with (1, N) corrections.
        x_next = pltpu.roll(x_t, shift=tm - 1, axis=0)             # x_next[t] = x_t[(t+1) % tm]
        d = out - x_next
        acc_ref[...] += d * d

        first_x = x_t[0:1, :]                                      # (1, N)
        last_out = out[tm - 1:tm, :]                               # (1, N)
        wrap_d = last_out - first_x                                # spurious in-tile wrap pair
        prev_d = carry_ref[...] - first_x                          # prev tile's last Output vs this tile's first Input
        gate = (i > 0).astype(jnp.float32)                         # boundary pair exists only for i > 0
        corr_ref[...] += gate * (prev_d * prev_d) - wrap_d * wrap_d
        carry_ref[...] = last_out                                  # carry Output[i*tm + tm - 1]

        # --- once, at the last grid step: reduce + scalar outputs ------------
        @pl.when(i == n_tiles - 1)
        def _finalize():
            loss_ref[0, 0] = (jnp.sum(acc_ref[...]) + jnp.sum(corr_ref[...])) * inv_denom
            l1_ref[0, 0] = jnp.sum(jnp.abs(wct_ref[...]))          # == sum|W_c|

    grid_spec = pltpu.PrefetchScalarGridSpec(
        num_scalar_prefetch=0,
        grid=(n_tiles,),
        in_specs=[
            pl.BlockSpec((tm, N), lambda i: (i, 0)),               # x: streamed, double-buffered
            pl.BlockSpec((N, N), lambda i: (0, 0)),                # W_c.T: resident
            pl.BlockSpec((N, 1), lambda i: (0, 0)),                # w_o column: resident
            pl.BlockSpec(memory_space=pltpu.MemorySpace.SMEM),     # bias scalar (1, 1)
        ],
        out_specs=(
            pl.BlockSpec(memory_space=pltpu.MemorySpace.SMEM),     # loss (1, 1)
            pl.BlockSpec(memory_space=pltpu.MemorySpace.SMEM),     # l1   (1, 1)
        ),
        scratch_shapes=[
            pltpu.VMEM((N, N), jnp.float32),    # folded weight w_eff
            pltpu.VMEM((tm, N), jnp.float32),   # squared-error accumulator (VPU add per tile)
            pltpu.VMEM((1, N), jnp.float32),    # boundary corrections
            pltpu.VMEM((1, N), jnp.float32),    # carried last Output row
        ],
    )

    loss, l1 = pl.pallas_call(
        kernel,
        out_shape=(jax.ShapeDtypeStruct((1, 1), jnp.float32),
                   jax.ShapeDtypeStruct((1, 1), jnp.float32)),
        grid_spec=grid_spec,
        compiler_params=pltpu.CompilerParams(
            dimension_semantics=("arbitrary",),      # sequential: carry + shared accumulators
            vmem_limit_bytes=32 * 1024 * 1024,
        ),
    )(x, wc.T, wo.reshape(N, 1), bo)                 # wrapper-side transpose = layout plumbing only
    return loss[0, 0], l1[0, 0]


def dense_base_reference(x, wc, wo, bo):
    """Pure-JAX reference mirroring the PyTorch forward literally."""
    S, N = x.shape
    weight = jax.nn.relu(jnp.eye(N, dtype=x.dtype) @ wc.T)           # (N, N)
    cl_output = x[:, None, :] * weight.T[None, :, :]                 # (S, N, N)
    out = jnp.einsum("sij,j->si", cl_output, wo[0]) + bo[0, 0]       # (S, N)
    loss = jnp.mean((out[:-1] - x[1:]) ** 2)
    l1 = jnp.sum(jnp.abs(wc))
    return loss, l1


if __name__ == "__main__":
    key = jax.random.PRNGKey(0)

    def make_inputs(k, S, N):
        k_x, k_wc, k_wo, k_bo = jax.random.split(k, 4)
        bound = 1.0 / (N ** 0.5)   # nn.Linear default U(-1/sqrt(fan_in), 1/sqrt(fan_in))
        x = jax.random.normal(k_x, (S, N), dtype=jnp.float32)
        wc = jax.random.uniform(k_wc, (N, N), jnp.float32, -bound, bound)   # causal_layer.weight
        wo = jax.random.uniform(k_wo, (1, N), jnp.float32, -bound, bound)   # output_layer.weight
        bo = jax.random.uniform(k_bo, (1, 1), jnp.float32, -bound, bound)   # output_layer.bias
        return x, wc, wo, bo

    # (S, N, block_s): single-tile case matching the original test shape, and a
    # multi-tile case with a non-power-of-two tile exercising the cross-tile carry.
    configs = [(8, 32, 8), (72, 32, 24)]

    for S, N, blk in configs:
        key, sub = jax.random.split(key)
        x, wc, wo, bo = make_inputs(sub, S, N)
        loss, l1 = jax.block_until_ready(dense_base_forward(x, wc, wo, bo, block_s=blk))
        loss_ref, l1_ref = dense_base_reference(x, wc, wo, bo)
        assert jnp.allclose(loss, loss_ref, rtol=1e-4, atol=1e-5), (S, N, blk, loss, loss_ref)
        assert jnp.allclose(l1, l1_ref, rtol=1e-4, atol=1e-5), (S, N, blk, l1, l1_ref)

    print("KERNEL_OK")
</pallas_src>

<mosaic_0001>
module attributes {stable_mosaic.version = 11 : i64} {
  func.func @kernel(%arg0: i32, %arg1: memref<8x32xf32, #tpu.memory_space<vmem>>, %arg2: memref<32x32xf32, #tpu.memory_space<vmem>>, %arg3: memref<32x1xf32, #tpu.memory_space<vmem>>, %arg4: memref<1x1xf32, #tpu.memory_space<smem>>, %arg5: memref<1x1xf32, #tpu.memory_space<smem>>, %arg6: memref<1x1xf32, #tpu.memory_space<smem>>, %arg7: memref<32x32xf32, #tpu.memory_space<vmem>>, %arg8: memref<8x32xf32, #tpu.memory_space<vmem>>, %arg9: memref<1x32xf32, #tpu.memory_space<vmem>>, %arg10: memref<1x32xf32, #tpu.memory_space<vmem>>) attributes {dimension_semantics = [#tpu.dimension_semantics<arbitrary>], iteration_bounds = array<i64: 1>, scalar_prefetch = 0 : i64, scratch_operands = 4 : i64, tpu.core_type = #tpu.core_type<tc>, window_params = [{transform_indices = @transform_0, window_bounds = array<i64: 8, 32>}, {pipeline_mode = #tpu.pipeline_mode<synchronous>, transform_indices = @transform_1, window_bounds = array<i64: 32, 32>}, {pipeline_mode = #tpu.pipeline_mode<synchronous>, transform_indices = @transform_2, window_bounds = array<i64: 32, 1>}, {transform_indices = @transform_3, window_bounds = array<i64: 1, 1>}, {transform_indices = @transform_4, window_bounds = array<i64: 1, 1>}, {transform_indices = @transform_5, window_bounds = array<i64: 1, 1>}]} {
    %c0_i32 = arith.constant 0 : i32
    %0 = arith.cmpi eq, %arg0, %c0_i32 : i32
    %1 = arith.extui %0 : i1 to i32
    %c0_i32_0 = arith.constant 0 : i32
    %2 = arith.cmpi ne, %1, %c0_i32_0 : i32
    scf.if %2 {
      %c0_21 = arith.constant 0 : index
      %c0_22 = arith.constant 0 : index
      %35 = vector.load %arg2[%c0_21, %c0_22] : memref<32x32xf32, #tpu.memory_space<vmem>>, vector<32x32xf32>
      %cst_23 = arith.constant 0.000000e+00 : f32
      %36 = vector.broadcast %cst_23 : f32 to vector<32x32xf32>
      %37 = arith.maximumf %35, %36 : vector<32x32xf32>
      %c0_24 = arith.constant 0 : index
      %c0_25 = arith.constant 0 : index
      %38 = vector.load %arg3[%c0_24, %c0_25] : memref<32x1xf32, #tpu.memory_space<vmem>>, vector<32x1xf32>
      %39 = vector.broadcast %38 : vector<32x1xf32> to vector<32x32xf32>
      %40 = arith.mulf %37, %39 : vector<32x32xf32>
      %c0_26 = arith.constant 0 : index
      %c0_27 = arith.constant 0 : index
      %41 = vector.load %arg7[%c0_26, %c0_27] : memref<32x32xf32, #tpu.memory_space<vmem>>, vector<32x32xf32>
      tpu.vector_store %arg7[%c0_26, %c0_27], %40 {strides = array<i32>} : memref<32x32xf32, #tpu.memory_space<vmem>>, vector<32x32xf32>,
      %cst_28 = arith.constant 0.000000e+00 : f32
      %42 = vector.broadcast %cst_28 : f32 to vector<8x32xf32>
      %c0_29 = arith.constant 0 : index
      %c0_30 = arith.constant 0 : index
      %43 = vector.load %arg8[%c0_29, %c0_30] : memref<8x32xf32, #tpu.memory_space<vmem>>, vector<8x32xf32>
      tpu.vector_store %arg8[%c0_29, %c0_30], %42 {strides = array<i32>} : memref<8x32xf32, #tpu.memory_space<vmem>>, vector<8x32xf32>,
      %cst_31 = arith.constant 0.000000e+00 : f32
      %44 = vector.broadcast %cst_31 : f32 to vector<1x32xf32>
      %c0_32 = arith.constant 0 : index
      %c0_33 = arith.constant 0 : index
      %45 = vector.load %arg9[%c0_32, %c0_33] : memref<1x32xf32, #tpu.memory_space<vmem>>, vector<1x32xf32>
      tpu.vector_store %arg9[%c0_32, %c0_33], %44 {strides = array<i32>} : memref<1x32xf32, #tpu.memory_space<vmem>>, vector<1x32xf32>,
      %cst_34 = arith.constant 0.000000e+00 : f32
      %46 = vector.broadcast %cst_34 : f32 to vector<1x32xf32>
      %c0_35 = arith.constant 0 : index
      %c0_36 = arith.constant 0 : index
      %47 = vector.load %arg10[%c0_35, %c0_36] : memref<1x32xf32, #tpu.memory_space<vmem>>, vector<1x32xf32>
      tpu.vector_store %arg10[%c0_35, %c0_36], %46 {strides = array<i32>} : memref<1x32xf32, #tpu.memory_space<vmem>>, vector<1x32xf32>,
    } else {
    }
    %c0 = arith.constant 0 : index
    %c0_1 = arith.constant 0 : index
    %3 = vector.load %arg1[%c0, %c0_1] : memref<8x32xf32, #tpu.memory_space<vmem>>, vector<8x32xf32>
    %c0_2 = arith.constant 0 : index
    %c0_3 = arith.constant 0 : index
    %4 = vector.load %arg7[%c0_2, %c0_3] : memref<32x32xf32, #tpu.memory_space<vmem>>, vector<32x32xf32>
    %cst = arith.constant dense<0.000000e+00> : vector<8x32xf32>
    %5 = tpu.matmul %3, %4, %cst {dimension_numbers = #tpu.dot_dimension_numbers<[1], [0], [0], [1], [0, 0, 1, 1], [], []>} : vector<8x32xf32>, vector<32x32xf32>, vector<8x32xf32> -> vector<8x32xf32>
    %c0_4 = arith.constant 0 : index
    %c0_5 = arith.constant 0 : index
    %6 = memref.load %arg4[%c0_4, %c0_5] : memref<1x1xf32, #tpu.memory_space<smem>>
    %7 = vector.broadcast %6 : f32 to vector<8x32xf32>
    %8 = arith.addf %5, %7 : vector<8x32xf32>
    %c7_i32 = arith.constant 7 : i32
    %9 = tpu.dynamic_rotate %3 by %c7_i32 dim 0 : vector<8x32xf32>, i32 -> vector<8x32xf32>
    %10 = arith.subf %8, %9 : vector<8x32xf32>
    %c0_6 = arith.constant 0 : index
    %c0_7 = arith.constant 0 : index
    %11 = vector.load %arg8[%c0_6, %c0_7] : memref<8x32xf32, #tpu.memory_space<vmem>>, vector<8x32xf32>
    %12 = arith.mulf %10, %10 : vector<8x32xf32>
    %13 = arith.addf %11, %12 : vector<8x32xf32>
    %c0_8 = arith.constant 0 : index
    %c0_9 = arith.constant 0 : index
    %14 = vector.load %arg8[%c0_8, %c0_9] : memref<8x32xf32, #tpu.memory_space<vmem>>, vector<8x32xf32>
    tpu.vector_store %arg8[%c0_8, %c0_9], %13 {strides = array<i32>} : memref<8x32xf32, #tpu.memory_space<vmem>>, vector<8x32xf32>,
    %15 = vector.extract_strided_slice %3 {offsets = [0, 0], sizes = [1, 32], strides = [1, 1]} : vector<8x32xf32> to vector<1x32xf32>
    %16 = vector.extract_strided_slice %8 {offsets = [7, 0], sizes = [1, 32], strides = [1, 1]} : vector<8x32xf32> to vector<1x32xf32>
    %17 = arith.subf %16, %15 : vector<1x32xf32>
    %c0_10 = arith.constant 0 : index
    %c0_11 = arith.constant 0 : index
    %18 = vector.load %arg10[%c0_10, %c0_11] : memref<1x32xf32, #tpu.memory_space<vmem>>, vector<1x32xf32>
    %19 = arith.subf %18, %15 : vector<1x32xf32>
    %c0_i32_12 = arith.constant 0 : i32
    %20 = arith.cmpi sgt, %arg0, %c0_i32_12 : i32
    %21 = arith.extui %20 : i1 to i32
    %22 = arith.sitofp %21 : i32 to f32
    %c0_13 = arith.constant 0 : index
    %c0_14 = arith.constant 0 : index
    %23 = vector.load %arg9[%c0_13, %c0_14] : memref<1x32xf32, #tpu.memory_space<vmem>>, vector<1x32xf32>
    %24 = arith.mulf %19, %19 : vector<1x32xf32>
    %25 = vector.broadcast %22 : f32 to vector<1x32xf32>
    %26 = arith.mulf %25, %24 : vector<1x32xf32>
    %27 = arith.mulf %17, %17 : vector<1x32xf32>
    %28 = arith.subf %26, %27 : vector<1x32xf32>
    %29 = arith.addf %23, %28 : vector<1x32xf32>
    %c0_15 = arith.constant 0 : index
    %c0_16 = arith.constant 0 : index
    %30 = vector.load %arg9[%c0_15, %c0_16] : memref<1x32xf32, #tpu.memory_space<vmem>>, vector<1x32xf32>
    tpu.vector_store %arg9[%c0_15, %c0_16], %29 {strides = array<i32>} : memref<1x32xf32, #tpu.memory_space<vmem>>, vector<1x32xf32>,
    %c0_17 = arith.constant 0 : index
    %c0_18 = arith.constant 0 : index
    %31 = vector.load %arg10[%c0_17, %c0_18] : memref<1x32xf32, #tpu.memory_space<vmem>>, vector<1x32xf32>
    tpu.vector_store %arg10[%c0_17, %c0_18], %16 {strides = array<i32>} : memref<1x32xf32, #tpu.memory_space<vmem>>, vector<1x32xf32>,
    %c0_i32_19 = arith.constant 0 : i32
    %32 = arith.cmpi eq, %arg0, %c0_i32_19 : i32
    %33 = arith.extui %32 : i1 to i32
    %c0_i32_20 = arith.constant 0 : i32
    %34 = arith.cmpi ne, %33, %c0_i32_20 : i32
    scf.if %34 {
      %c0_21 = arith.constant 0 : index
      %c0_22 = arith.constant 0 : index
      %35 = vector.load %arg8[%c0_21, %c0_22] : memref<8x32xf32, #tpu.memory_space<vmem>>, vector<8x32xf32>
      %36 = vector.shape_cast %35 : vector<8x32xf32> to vector<1x8x32xf32>
      %cst_23 = arith.constant dense<0.000000e+00> : vector<1xf32>
      %37 = vector.multi_reduction <add>, %36, %cst_23 [1, 2] : vector<1x8x32xf32> to vector<1xf32>
      %38 = vector.shape_cast %37 : vector<1xf32> to vector<1x1x1xf32>
      %39 = vector.extract %38[0, 0, 0] : f32 from vector<1x1x1xf32>
      %c0_24 = arith.constant 0 : index
      %c0_25 = arith.constant 0 : index
      %40 = vector.load %arg9[%c0_24, %c0_25] : memref<1x32xf32, #tpu.memory_space<vmem>>, vector<1x32xf32>
      %41 = vector.shape_cast %40 : vector<1x32xf32> to vector<1x1x32xf32>
      %cst_26 = arith.constant dense<0.000000e+00> : vector<1xf32>
      %42 = vector.multi_reduction <add>, %41, %cst_26 [1, 2] : vector<1x1x32xf32> to vector<1xf32>
      %43 = vector.shape_cast %42 : vector<1xf32> to vector<1x1x1xf32>
      %44 = vector.extract %43[0, 0, 0] : f32 from vector<1x1x1xf32>
      %45 = arith.addf %39, %44 : f32
      %cst_27 = arith.constant 0.00446428591 : f32
      %46 = arith.mulf %45, %cst_27 : f32
      %c0_28 = arith.constant 0 : index
      %c0_29 = arith.constant 0 : index
      %47 = memref.load %arg5[%c0_28, %c0_29] : memref<1x1xf32, #tpu.memory_space<smem>>
      memref.store %46, %arg5[%c0_28, %c0_29] : memref<1x1xf32, #tpu.memory_space<smem>>
      %c0_30 = arith.constant 0 : index
      %c0_31 = arith.constant 0 : index
      %48 = vector.load %arg2[%c0_30, %c0_31] : memref<32x32xf32, #tpu.memory_space<vmem>>, vector<32x32xf32>
      %49 = math.absf %48 : vector<32x32xf32>
      %50 = vector.shape_cast %49 : vector<32x32xf32> to vector<1x32x32xf32>
      %cst_32 = arith.constant dense<0.000000e+00> : vector<1xf32>
      %51 = vector.multi_reduction <add>, %50, %cst_32 [1, 2] : vector<1x32x32xf32> to vector<1xf32>
      %52 = vector.shape_cast %51 : vector<1xf32> to vector<1x1x1xf32>
      %53 = vector.extract %52[0, 0, 0] : f32 from vector<1x1x1xf32>
      %c0_33 = arith.constant 0 : index
      %c0_34 = arith.constant 0 : index
      %54 = memref.load %arg6[%c0_33, %c0_34] : memref<1x1xf32, #tpu.memory_space<smem>>
      memref.store %53, %arg6[%c0_33, %c0_34] : memref<1x1xf32, #tpu.memory_space<smem>>
    } else {
    }
    return
  }
  func.func @transform_0(%arg0: i32) -> (i32, i32) {
    %c0_i32 = arith.constant 0 : i32
    %c0_i32_0 = arith.constant 0 : i32
    return %arg0, %c0_i32 : i32, i32
  }
  func.func @transform_1(%arg0: i32) -> (i32, i32) {
    %c0_i32 = arith.constant 0 : i32
    %c0_i32_0 = arith.constant 0 : i32
    %c0_i32_1 = arith.constant 0 : i32
    return %c0_i32, %c0_i32_0 : i32, i32
  }
  func.func @transform_2(%arg0: i32) -> (i32, i32) {
    %c0_i32 = arith.constant 0 : i32
    %c0_i32_0 = arith.constant 0 : i32
    %c0_i32_1 = arith.constant 0 : i32
    return %c0_i32, %c0_i32_0 : i32, i32
  }
  func.func @transform_3(%arg0: i32) -> (i32, i32) {
    %c0_i32 = arith.constant 0 : i32
    %c0_i32_0 = arith.constant 0 : i32
    %c0_i32_1 = arith.constant 0 : i32
    return %c0_i32, %c0_i32_0 : i32, i32
  }
  func.func @transform_4(%arg0: i32) -> (i32, i32) {
    %c0_i32 = arith.constant 0 : i32
    %c0_i32_0 = arith.constant 0 : i32
    %c0_i32_1 = arith.constant 0 : i32
    return %c0_i32, %c0_i32_0 : i32, i32
  }
  func.func @transform_5(%arg0: i32) -> (i32, i32) {
    %c0_i32 = arith.constant 0 : i32
    %c0_i32_0 = arith.constant 0 : i32
    %c0_i32_1 = arith.constant 0 : i32
    return %c0_i32, %c0_i32_0 : i32, i32
  }
}

</mosaic_0001>

<bundles_post_ra>
// kernel: tpu_custom_call.1
= control target key start
LH: loop header
LB: loop body
LE: loop exit
PB: predicated region body
PF: predicated region fallthrough
CT: control target
= control target key end

     0   :  { %12 = vsyncpa [#allocation8], 0  ;;  %v338_v2 = vmov 0   ;;  %s453_s0 = inlined_call_operand.vmem [shape: f32[8,32], index: 0, kind: input, shape index: {}]   ;;  %s454_s1 = inlined_call_operand.vmem [shape: f32[32,32], index: 1, kind: input, shape index: {}]   ;;  %s455_s2 = inlined_call_operand.vmem [shape: f32[32,1], index: 2, kind: input, shape index: {}]   ;;  %s456_s3 = inlined_call_operand.<no memory space> [shape: f32[1,1], index: 3, kind: input, shape index: {}]   ;;  %s457_s4 = inlined_call_operand.hbm [shape: f32[1,1], index: 4, kind: output, shape index: {0}]   ;;  %s458_s5 = inlined_call_operand.hbm [shape: f32[1,1], index: 5, kind: output, shape index: {1}]  }
   0x1   :  { %v36_v0 = vld [vmem:[%s455_s2 + $0x10] sm:$0xff]  ;;  %v34_v1 = vld [vmem:[%s455_s2] sm:$0xff]  ;;  %313 = vset.pattern.permute.xlu1 %v338_v2  ;;  %312 = vset.pattern.permute.xlu0 %v338_v2 }
   0x2   :  { %50 = vperm.xlu1 %313, %v36_v0   ;;  %40 = vperm.xlu0 %312, %v34_v1  }
   0x3   :  { %13 = vsyncpa [#allocation10], 0  ;;  %v37_v3 = vld [vmem:[%s455_s2 + $0x18] sm:$0xff]  ;;  %v35_v4 = vld [vmem:[%s455_s2 + $0x8] sm:$0xff]  ;;  %v339_v5 = vmov 0.0|0.0   ;;  %vm62_vm0 = vcmask 261120   ;;  %v176_v32 = vlaneseq  ;;  %v77_v33 = vstv %s456_s3 }
   0x4   :  { %293 = vmatprep.subr.bf16.mxu0 %v339_v5  ;;  %v340_v6 = vmov 0.0   ;;  %vm341_vm1 = vmmov 0   ;;  %v391_v7 = vld [vmem:[%s454_s1 + $0x10] sm:$0xff]  ;;  %v26_v8 = vld [vmem:[%s454_s1] sm:$0xff]  ;;  %v400_v11 = vld [vmem:[%s454_s1 + $0x18] sm:$0xff]  ;;  %vm68_vm2 = vcmask 253952  }
   0x5   :  { %67 = vst.msk [vmem:[#allocation3] sm:$0xff] %vm62_vm0, %v340_v6  ;;  %290 = vmatprep.mubr.msk.f32.mxu0 %vm341_vm1, %v340_v6  ;;  %v32_v9 = vmax.f32 %v391_v7, 0.0  ;;  %v30_v10 = vmax.f32 %v26_v8, 0.0  ;;  %v27_v12 = vld [vmem:[%s454_s1 + $0x8] sm:$0xff]  ;;  %v33_v17 = vmax.f32 %v400_v11, 0.0  ;;  %v71_v29 = vld [vmem:[%s453_s0] sm:$0xff] }
   0x6   :  { %55 = vperm.xlu1 %313, %v37_v3   ;;  %45 = vperm.xlu0 %312, %v35_v4   ;;  %v31_v18 = vmax.f32 %v27_v12, 0.0  ;;  %69 = vst.msk [vmem:[#allocation4] sm:$0x1] %vm68_vm2, %v340_v6  ;;  %70 = vst.msk [vmem:[#allocation5] sm:$0x1] %vm68_vm2, %v340_v6  ;;  %v152_v34 = vrot.slane %v71_v29, 1 }
   0x7   :  { %v342_v30 = vmov 1966171168   ;;  %vm194_vm3 = vcmask 261127   ;;  %v177_v39 = vshrl.u32 %v176_v32, 7  ;;  %v229_v42 = vand.u32 2147483647, %v26_v8 }
   0x8   :  { %v174_v31 = vunpack.c.l.s4 %v342_v30  ;;  %v230_v43 = vand.u32 2147483647, %v27_v12  ;;  %v231_v48 = vand.u32 2147483647, %v391_v7  ;;  %v232_v57 = vand.u32 2147483647, %v400_v11 }
   0x9   :  { %v233_v51 = vsel %vm62_vm0, %v229_v42, 0.0  ;;  %s314_s16 = scalar_lea.hbm %s458_s5, 16 }
   0xa   :  { %v175_v38 = vunpack.c.0.s8 %v174_v31  ;;  %v234_v52 = vsel %vm62_vm0, %v230_v43, 0.0  ;;  %v236_v58 = vsel %vm62_vm0, %v231_v48, 0.0  ;;  %v238_v63 = vsel %vm62_vm0, %v232_v57, 0.0  ;;  %p315_p0 = scmp.ne.s32.totalorder %s458_s5, %s314_s16  ;;  %p318_p1 = scmp.lt.u32.totalorder %s314_s16, %s458_s5 }
   0xb   :  { %v235_v55 = vadd.f32 %v234_v52, %v233_v51 }
   0xc   :  { %v154_v44 = vld [vmem:[#allocation3] sm:$0xff]  ;;  %v178_v46 = vsub.s32 %v175_v38, %v177_v39  ;;  %p320_p2 = pnand %p318_p1, %p315_p0 }
   0xd   :  { %v161_v36 = vld [vmem:[#allocation5] sm:$0x1]  ;;  %v237_v61 = vadd.f32 %v236_v58, %v235_v55  ;;  %v166_v1 = vld [vmem:[#allocation4] sm:$0x1] }
   0xe   :  { %v162_v47 = vsub.f32 %v161_v36, %v71_v29 }
   0xf   :  { %v239_v4 = vadd.f32 %v238_v63, %v237_v61 }
  0x10   :  { %v167_v54 = vmul.f32 %v162_v47, %v162_v47 }
  0x12   :  { %v169_v60 = vmul.f32 0.0, %v167_v54 }
  0x81   :  { %v51_v13 = vpop.permute.xlu1 %50  ;;  %v41_v14 = vpop.permute.xlu0 %40 }
  0x82   :  { %v60_v15 = vmul.f32 %v51_v13, %v32_v9  ;;  %v58_v16 = vmul.f32 %v41_v14, %v30_v10 }
  0x84   :  { %65 = vst.msk [vmem:[#allocation2 + $0x10] sm:$0xff] %vm62_vm0, %v60_v15  ;;  %63 = vst.msk [vmem:[#allocation2] sm:$0xff] %vm62_vm0, %v58_v16 }
  0x85   :  { %v56_v19 = vpop.permute.xlu1 %55  ;;  %v46_v20 = vpop.permute.xlu0 %45 }
  0x86   :  { %v61_v21 = vmul.f32 %v56_v19, %v33_v17  ;;  %v59_v22 = vmul.f32 %v46_v20, %v31_v18 }
  0x88   :  { %66 = vst.msk [vmem:[#allocation2 + $0x18] sm:$0xff] %vm62_vm0, %v61_v21  ;;  %64 = vst.msk [vmem:[#allocation2 + $0x8] sm:$0xff] %vm62_vm0, %v59_v22 }
  0x8b   :  { %v72_v23 = vld [vmem:[#allocation2] sm:$0xff]  ;;  %v74_v26 = vld [vmem:[#allocation2 + $0x10] sm:$0xff] }
  0x8f   :  { %v73_v24 = vld [vmem:[#allocation2 + $0x8] sm:$0xff]  ;;  %v75_v27 = vld [vmem:[#allocation2 + $0x18] sm:$0xff] }
  0x90   :  { %v294_v25 = vpack.c.bf16 %v73_v24, %v72_v23  ;;  %v297_v28 = vpack.c.bf16 %v75_v27, %v74_v26 }
  0x92   :  { %295 = vmatpush3.bf16.msra.mxu0 %v294_v25 }
  0x93   :  { %296 = vmatprep.subr.bf16.mxu0 %v339_v5 }
  0x96   :  { %298 = vmatpush3.bf16.msra.mxu0 %v297_v28 }
  0x99   :  { %291 = vmatmul.mubr.msk.f32.vlgmr.msra.gmra.mrb[0].mxu0 %vm62_vm0, %v71_v29 }
 0x16c   :  { %v148_v35 = vpop.f32.mrb[0].mxu0 }
 0x16d   :  { %v149_v37 = vadd.f32 %v148_v35, %v77_v33  ;;  %v292_v40 = vpop.f32.mrb[1].mxu0 }
 0x16f   :  { %v153_v41 = vsub.f32 %v149_v37, %v152_v34  ;;  %195 = vst.msk [vmem:[#allocation5 - $0x7] sm:$0x80] %vm194_vm3, %v149_v37 }
 0x171   :  { %v155_v45 = vmul.f32 %v153_v41, %v153_v41 }
 0x173   :  { %v156_v49 = vadd.f32 %v155_v45, %v154_v44  ;;  %v172_v50 = vcombine.high %v155_v45, %v155_v45 }
 0x175   :  { %157 = vst.msk [vmem:[#allocation3] sm:$0xff] %vm62_vm0, %v156_v49  ;;  %v179_v53 = vrot.slane %v172_v50, %v178_v46 }
 0x177   :  { %v180_v56 = vcombine.high %v179_v53, %v179_v53 }
 0x179   :  { %v187_v59 = vrot.slane %v180_v56, %v178_v46 }
 0x17b   :  { %v188_v62 = vcombine.high %v187_v59, %v187_v59 }
 0x17c   :  { %v199_v0 = vld [vmem:[#allocation3] sm:$0xff] }
 0x17d   :  { %v200_v2 = vsel %vm62_vm0, %v199_v0, 0.0  ;;  %v190_v3 = vsub.f32 %v169_v60, %v188_v62 }
 0x17e   :  { %201 = vadd.xlane.f32.xlu0 %v200_v2 }
 0x17f   :  { %v191_v5 = vadd.f32 %v190_v3, %v166_v1 }
 0x181   :  { %193 = vst.msk [vmem:[#allocation4] sm:$0x1] %vm68_vm2, %v191_v5 }
 0x182   :  { %240 = vadd.xlane.f32.xlu0 %v239_v4 }
 0x188   :  { %v210_v6 = vld [vmem:[#allocation4] sm:$0x1] }
 0x189   :  { %v211_v7 = vsel %vm68_vm2, %v210_v6, 0.0 }
 0x18a   :  { %212 = vadd.xlane.f32.xlu1 %v211_v7 }
 0x20b   :  { %v202_v8 = vpop.xlane.xlu0 %201 }
 0x20c   :  { %v203_v9 = vrot.slane %v202_v8, 4 }
 0x20e   :  { %v204_v10 = vadd.f32 %v203_v9, %v202_v8 }
 0x20f   :  { %v241_v11 = vpop.xlane.xlu0 %240 }
 0x210   :  { %v205_v12 = vrot.slane %v204_v10, 2  ;;  %v242_v13 = vrot.slane %v241_v11, 4 }
 0x212   :  { %v206_v14 = vadd.f32 %v205_v12, %v204_v10  ;;  %v243_v15 = vadd.f32 %v242_v13, %v241_v11 }
 0x214   :  { %v207_v16 = vrot.slane %v206_v14, 1  ;;  %v244_v18 = vrot.slane %v243_v15, 2 }
 0x216   :  { %v208_v17 = vadd.f32 %v207_v16, %v206_v14  ;;  %v245_v22 = vadd.f32 %v244_v18, %v243_v15 }
 0x217   :  { %v213_v19 = vpop.xlane.xlu1 %212 }
 0x218   :  { %v214_v20 = vrot.slane %v213_v19, 4  ;;  %299 = vpush %v208_v17  ;;  %v246_v25 = vrot.slane %v245_v22, 1 }
 0x21a   :  { %v215_v21 = vadd.f32 %v214_v20, %v213_v19  ;;  %v247_v28 = vadd.f32 %v246_v25, %v245_v22 }
 0x21c   :  { %v216_v23 = vrot.slane %v215_v21, 2 }
 0x21e   :  { %v217_v24 = vadd.f32 %v216_v23, %v215_v21 }
 0x220   :  { %v218_v26 = vrot.slane %v217_v24, 1 }
 0x222   :  { %v219_v27 = vadd.f32 %v218_v26, %v217_v24 }
 0x224   :  { %301 = vpush %v219_v27 }
 0x225   :  { %303 = vpush %v247_v28 }
 0x249   :  { %s300_s0 = spop %299 }
 0x255   :  { %s302_s3 = spop %301 }
 0x256   :  { %s221_s11 = sadd.f32 %s302_s3, %s300_s0  ;;  %s304_s12 = spop %303 }
 0x257   :  { %250 = sst [smem:[#allocation9]] %s304_s12 }
 0x258   :  { %s222_s13 = smul.f32 0.004464286, %s221_s11 }
 0x259   :  { %323 = shalt.err (!%p320_p2)
}
 0x25a   :  { %s343_s21 = smov [#allocation9]   ;;  %224 = sst [smem:[#allocation7]] %s222_s13 }
 0x25b   :  { %266 = dma.smem_to_hbm %s343_s21, 16, %s458_s5, [#allocation10]  }
 0x25c   :  { %s324_s26 = scalar_lea.hbm %s457_s4, 16 }
 0x25d   :  { %p325_p3 = scmp.ne.s32.totalorder %s457_s4, %s324_s26  ;;  %p328_p4 = scmp.lt.u32.totalorder %s324_s26, %s457_s4 }
 0x25f   :  { %p330_p5 = pnand %p328_p4, %p325_p3 }
 0x261   :  { %333 = shalt.err (!%p330_p5)
}
 0x262   :  { %s344_s30 = smov [#allocation7]  }
 0x263   :  { %258 = dma.smem_to_hbm %s344_s30, 16, %s457_s4, [#allocation8]  }
 0x264   :  { %334 = dma.done.wait [#allocation8], 16  }
 0x265   :  { %335 = vsyncadd [#allocation8], 4294967280 }
 0x266   :  { %336 = dma.done.wait [#allocation10], 16  }
 0x267   :  { %337 = vsyncadd [#allocation10], 4294967280 }
 0x268   :  { %273 = sfence }
 0x269   :  { %274 = vsyncpa [#allocation8], 1 }
 0x26a   :  { %275 = vsyncpa [#allocation10], 1 }

</bundles_post_ra>
